<compile_context>
chip_gen: v7x
topology: tpu7x:2x2x1
jax: 0.10.0
libtpu: 0.0.40
codegen_flags: <defaults>
</compile_context>

<pallas_src>
import functools
from math import sqrt

import jax
import jax.numpy as jnp
from jax import lax
from jax.experimental import pallas as pl
from jax.experimental.pallas import tpu as pltpu

# Contract the LAST dim of both operands (x @ w.T / q @ k.T) -- no XLU transpose.
_DN_CONTRACT_LAST = (((1,), (1,)), ((), ()))


def _round_up(x, m):
    return (x + m - 1) // m * m


def _vmem_limit_bytes(block_shape_dtypes, scratch_shape_dtypes):
    """Rough VMEM budget: (sublane,128)-padded tiles, inputs/outputs double-buffered,
    scratch single-buffered, x2 headroom + 8 MiB for compiler-internal scratch."""
    def padded(shape, dtype):
        s = list(shape) if shape else [1]
        s[-1] = _round_up(s[-1], 128)
        if len(s) >= 2:
            s[-2] = _round_up(s[-2], 16)   # conservative (covers bf16 sublane packing)
        n = 1
        for d in s:
            n *= d
        return n * jnp.dtype(dtype).itemsize

    est = sum(2 * padded(s, d) for s, d in block_shape_dtypes)
    est += sum(padded(s, d) for s, d in scratch_shape_dtypes)
    est = 2 * est + (8 << 20)
    return int(min(max(est, 16 << 20), 120 << 20))


# --------------------------- stage 1: projections ---------------------------

def _qkv_projection_kernel(xq_ref, xk_ref, xv_ref,
                           wq_ref, bq_ref, wk_ref, bk_ref, wv_ref, bv_ref,
                           q_out_ref, k_out_ref, v_out_ref):
    """One (batch b, head h) grid step: head-major Q/K/V linear projections."""
    f32 = jnp.float32
    mxu = wq_ref.dtype   # bf16 in production; f32 for exact verification

    def project(x_ref, w_ref, b_ref, out_ref):
        x = x_ref[0].astype(mxu)                                   # (rows, d_model)
        y = lax.dot_general(x, w_ref[0], _DN_CONTRACT_LAST,        # x @ w[h].T
                            preferred_element_type=f32)            # (rows, E|D) f32
        y = y + b_ref[0].astype(f32)
        out_ref[0, 0] = y.astype(out_ref.dtype)

    project(xq_ref, wq_ref, bq_ref, q_out_ref)   # 1/sqrt(E) already folded into wq/bq
    project(xk_ref, wk_ref, bk_ref, k_out_ref)
    project(xv_ref, wv_ref, bv_ref, v_out_ref)


def _project_qkv(prep, queries, keys, values):
    B, L, d_model = queries.shape
    _, S, _ = keys.shape
    H, E, _ = prep["wq"].shape
    D = prep["wv"].shape[1]
    cdt = prep["wq"].dtype

    x_spec = lambda rows: pl.BlockSpec((1, rows, d_model), lambda b, h: (b, 0, 0))
    w_spec = lambda r: pl.BlockSpec((1, r, d_model), lambda b, h: (h, 0, 0))
    b_spec = lambda r: pl.BlockSpec((1, 1, r), lambda b, h: (h, 0, 0))
    o_spec = lambda rows, r: pl.BlockSpec((1, 1, rows, r), lambda b, h: (b, h, 0, 0))

    blocks = [((1, L, d_model), queries.dtype), ((1, S, d_model), keys.dtype),
              ((1, S, d_model), values.dtype),
              ((1, E, d_model), cdt), ((1, 1, E), jnp.float32),
              ((1, E, d_model), cdt), ((1, 1, E), jnp.float32),
              ((1, D, d_model), cdt), ((1, 1, D), jnp.float32),
              ((1, 1, L, E), cdt), ((1, 1, S, E), cdt), ((1, 1, S, D), cdt)]

    return pl.pallas_call(
        _qkv_projection_kernel,
        out_shape=(jax.ShapeDtypeStruct((B, H, L, E), cdt),
                   jax.ShapeDtypeStruct((B, H, S, E), cdt),
                   jax.ShapeDtypeStruct((B, H, S, D), cdt)),
        grid=(B, H),
        in_specs=[x_spec(L), x_spec(S), x_spec(S),
                  w_spec(E), b_spec(E), w_spec(E), b_spec(E), w_spec(D), b_spec(D)],
        out_specs=(o_spec(L, E), o_spec(S, E), o_spec(S, D)),
        compiler_params=pltpu.CompilerParams(
            dimension_semantics=("parallel", "parallel"),
            vmem_limit_bytes=_vmem_limit_bytes(blocks, [])),
    )(queries, keys, values,
      prep["wq"], prep["bq"], prep["wk"], prep["bk"], prep["wv"], prep["bv"])


# ------------------- stage 2: flash attention + out proj --------------------

def _attention_out_kernel(q_ref, k_ref, v_ref, wo_ref, bo_ref, o_ref,
                          m_sc, l_sc, acc_sc, out_sc):
    """One (b, l_tile, head, kv_tile) grid step: online-softmax attention for one
    head over one KV tile; on the last KV tile the head is projected through its
    W_o slice and accumulated into the full-width output accumulator."""
    f32 = jnp.float32
    mxu = q_ref.dtype
    h = pl.program_id(2)
    kv = pl.program_id(3)

    @pl.when(kv == 0)
    def _():
        m_sc[...] = jnp.full(m_sc.shape, -jnp.inf, dtype=m_sc.dtype)
        l_sc[...] = jnp.zeros(l_sc.shape, dtype=l_sc.dtype)
        acc_sc[...] = jnp.zeros(acc_sc.shape, dtype=acc_sc.dtype)

    q = q_ref[0, 0]          # (lt,  E)  scale already folded into W_q
    k = k_ref[0, 0]          # (s_t, E)
    v = v_ref[0, 0]          # (s_t, D)

    # TODO(synk): attn_mask not applied (FullAttention mask_flag=False default).
    s = lax.dot_general(q, k, _DN_CONTRACT_LAST,
                        preferred_element_type=f32)              # (lt, s_t) = q @ k.T

    m_prev = m_sc[...]
    m_new = jnp.maximum(m_prev, jnp.max(s, axis=-1, keepdims=True))
    alpha = jnp.exp(m_prev - m_new)                              # f32 softmax math
    p = jnp.exp(s - m_new)
    l_sc[...] = alpha * l_sc[...] + jnp.sum(p, axis=-1, keepdims=True)
    acc_sc[...] = alpha * acc_sc[...] + jnp.dot(p.astype(mxu), v,
                                                preferred_element_type=f32)
    m_sc[...] = m_new

    @pl.when(kv == pl.num_programs(3) - 1)
    def _():
        # Normalize this head, project through its (D, d_model) slice of W_o and
        # accumulate into the lane-dense (lt, d_model) output accumulator.
        o_h = acc_sc[...] * pl.reciprocal(l_sc[...], approx=False)   # EUP divide
        proj = jnp.dot(o_h.astype(mxu), wo_ref[0], preferred_element_type=f32)

        @pl.when(h == 0)
        def _():
            out_sc[...] = proj + bo_ref[...].astype(f32)

        @pl.when(h != 0)
        def _():
            out_sc[...] = out_sc[...] + proj

        @pl.when(h == pl.num_programs(2) - 1)
        def _():
            o_ref[0] = out_sc[...].astype(o_ref.dtype)


def _attention_output(prep, qh, kh, vh, out_dtype, *, l_tile=256, kv_tile=512):
    B, H, L, E = qh.shape
    S, D = vh.shape[2], vh.shape[3]
    d_model = prep["wo"].shape[2]
    cdt = qh.dtype

    lt = min(L, l_tile)      # fill the 256-row MXU on v6e/v7x at real sizes
    s_t = min(S, kv_tile)    # flash tile over keys/values (bounds VMEM on v7x)
    assert L % lt == 0 and S % s_t == 0, "L / S must divide the chosen tiles"
    n_lt, n_kv = L // lt, S // s_t

    q_spec = pl.BlockSpec((1, 1, lt, E), lambda b, i, h, kv: (b, h, i, 0))
    k_spec = pl.BlockSpec((1, 1, s_t, E), lambda b, i, h, kv: (b, h, kv, 0))
    v_spec = pl.BlockSpec((1, 1, s_t, D), lambda b, i, h, kv: (b, h, kv, 0))
    # TODO(synk): wo/bo have constant block indices; pipeline_mode=pl.Buffered(1)
    #             would single-buffer them and shave a little more VMEM.
    wo_spec = pl.BlockSpec((1, D, d_model), lambda b, i, h, kv: (h, 0, 0))
    bo_spec = pl.BlockSpec((1, d_model), lambda b, i, h, kv: (0, 0))
    o_spec = pl.BlockSpec((1, lt, d_model), lambda b, i, h, kv: (b, i, 0))

    scratch_shapes = [
        pltpu.VMEM((lt, 1), jnp.float32),         # running max  m
        pltpu.VMEM((lt, 1), jnp.float32),         # running sum  l
        pltpu.VMEM((lt, D), jnp.float32),         # per-head P@V accumulator
        pltpu.VMEM((lt, d_model), jnp.float32),   # out-projection accumulator
    ]
    blocks = [((1, 1, lt, E), cdt), ((1, 1, s_t, E), cdt), ((1, 1, s_t, D), cdt),
              ((1, D, d_model), cdt), ((1, d_model), jnp.float32),
              ((1, lt, d_model), out_dtype)]
    scratch = [((lt, 1), jnp.float32), ((lt, 1), jnp.float32),
               ((lt, D), jnp.float32), ((lt, d_model), jnp.float32)]

    return pl.pallas_call(
        _attention_out_kernel,
        out_shape=jax.ShapeDtypeStruct((B, L, d_model), out_dtype),
        grid=(B, n_lt, H, n_kv),
        in_specs=[q_spec, k_spec, v_spec, wo_spec, bo_spec],
        out_specs=o_spec,
        scratch_shapes=scratch_shapes,
        compiler_params=pltpu.CompilerParams(
            # heads + kv tiles revisit the output block -> "arbitrary";
            # batch and L tiles are independent -> "parallel" (megacore sharding).
            dimension_semantics=("parallel", "parallel", "arbitrary", "arbitrary"),
            vmem_limit_bytes=_vmem_limit_bytes(blocks, scratch)),
    )(qh, kh, vh, prep["wo"], prep["bo"])


# ------------------------------ module wrapper ------------------------------

def init_attention_layer_params(key, d_model, n_heads, d_keys=None, d_values=None,
                                dtype=jnp.float32):
    """Torch-layout nn.Linear params with U(-1/sqrt(fan_in), +1/sqrt(fan_in)) init."""
    d_keys = d_keys or d_model // n_heads
    d_values = d_values or d_model // n_heads
    ks = jax.random.split(key, 8)

    def lin(kw, kb, fan_in, fan_out):
        bound = 1.0 / sqrt(fan_in)
        w = jax.random.uniform(kw, (fan_out, fan_in), dtype, -bound, bound)
        b = jax.random.uniform(kb, (fan_out,), dtype, -bound, bound)
        return w, b

    wq, bq = lin(ks[0], ks[1], d_model, d_keys * n_heads)
    wk, bk = lin(ks[2], ks[3], d_model, d_keys * n_heads)
    wv, bv = lin(ks[4], ks[5], d_model, d_values * n_heads)
    wo, bo = lin(ks[6], ks[7], d_values * n_heads, d_model)
    return dict(wq=wq, bq=bq, wk=wk, bk=bk, wv=wv, bv=bv, wo=wo, bo=bo)


def prepare_attention_params(params, n_heads, compute_dtype=jnp.bfloat16):
    """One-time (init/load-time) re-layout of the torch-style params:
      * head-major weights: wq/wk -> (H, E, d_model), wv -> (H, D, d_model),
        wo -> (H, D, d_model) so the kernels index the leading head axis,
      * 1/sqrt(E) folded into W_q / b_q (no per-step VPU scale in the kernel),
      * MXU weight operands pre-cast to compute_dtype (bf16 in production);
        biases stay f32 and are added after the f32 accumulation."""
    H = n_heads
    d_model = params["wq"].shape[1]
    E = params["wq"].shape[0] // H
    D = params["wv"].shape[0] // H
    scale = 1.0 / sqrt(E)
    return dict(
        wq=(params["wq"].reshape(H, E, d_model) * scale).astype(compute_dtype),
        bq=(params["bq"].reshape(H, 1, E) * scale).astype(jnp.float32),
        wk=params["wk"].reshape(H, E, d_model).astype(compute_dtype),
        bk=params["bk"].reshape(H, 1, E).astype(jnp.float32),
        wv=params["wv"].reshape(H, D, d_model).astype(compute_dtype),
        bv=params["bv"].reshape(H, 1, D).astype(jnp.float32),
        wo=params["wo"].reshape(d_model, H, D).transpose(1, 2, 0)
             .astype(compute_dtype),                               # (H, D, d_model)
        bo=params["bo"].reshape(1, d_model).astype(jnp.float32),
    )


def attention_layer_forward(prepared_params, queries, keys, values, attn_mask=None,
                            mix=False):
    """AttentionLayer forward (mix=False). Returns (output, attn=None)."""
    if mix:
        # TODO(synk): mix=True (head/seq transpose before the out projection) is not
        # implemented; AttentionLayer default is mix=False.
        raise NotImplementedError("mix=True not supported by the Pallas kernels")
    del attn_mask  # TODO(synk): FullAttention mask_flag=False — mask never applied.
    qh, kh, vh = _project_qkv(prepared_params, queries, keys, values)
    out = _attention_output(prepared_params, qh, kh, vh, queries.dtype)
    return out, None   # attn=None (output_attention=False)


# ----------------------------------- main -----------------------------------

if __name__ == "__main__":
    B, L, S = 2, 8, 8
    d_model, n_heads = 32, 4

    key = jax.random.PRNGKey(0)
    kp, kq, kk, kv = jax.random.split(key, 4)
    params = init_attention_layer_params(kp, d_model, n_heads)

    queries = jax.random.normal(kq, (B, L, d_model), jnp.float32)
    keys = jax.random.normal(kk, (B, S, d_model), jnp.float32)
    values = jax.random.normal(kv, (B, S, d_model), jnp.float32)

    # Pure-JAX reference of the torch module's math (f32 throughout).
    def ref_forward(p, q_in, k_in, v_in):
        H = n_heads
        q = (q_in @ p["wq"].T + p["bq"]).reshape(B, L, H, -1)
        k = (k_in @ p["wk"].T + p["bk"]).reshape(B, S, H, -1)
        v = (v_in @ p["wv"].T + p["bv"]).reshape(B, S, H, -1)
        E = q.shape[-1]
        s = jnp.einsum("blhe,bshe->bhls", q, k) / sqrt(E)
        a = jax.nn.softmax(s, axis=-1)
        o = jnp.einsum("bhls,bshd->blhd", a, v).reshape(B, L, -1)
        return o @ p["wo"].T + p["bo"]

    ref = ref_forward(params, queries, keys, values)

    # 1) f32 MXU-operand path: tight parity with the reference (validates the math).
    prep_f32 = prepare_attention_params(params, n_heads, compute_dtype=jnp.float32)
    out_f32, attn = attention_layer_forward(prep_f32, queries, keys, values,
                                            attn_mask=None, mix=False)
    out_f32 = jax.block_until_ready(out_f32)
    assert out_f32.shape == (B, L, d_model)
    assert attn is None
    err_f32 = float(jnp.max(jnp.abs(out_f32 - ref)))
    assert jnp.allclose(out_f32, ref, atol=1e-4, rtol=1e-4), err_f32

    # 2) bf16 MXU-operand path (production setting on v5e/v6e/v7x MXUs):
    #    softmax stays f32; tolerance reflects bf16 operand rounding.
    prep_bf16 = prepare_attention_params(params, n_heads, compute_dtype=jnp.bfloat16)
    out_bf16, _ = attention_layer_forward(prep_bf16, queries, keys, values,
                                          attn_mask=None, mix=False)
    out_bf16 = jax.block_until_ready(out_bf16)
    err_bf16 = float(jnp.max(jnp.abs(out_bf16 - ref)))
    assert jnp.allclose(out_bf16, ref, atol=5e-2, rtol=5e-2), err_bf16

    print("KERNEL_OK")
</pallas_src>

<mosaic_0001>
module attributes {stable_mosaic.version = 11 : i64} {
  func.func @_qkv_projection_kernel(%arg0: i32, %arg1: i32, %arg2: memref<1x8x32xf32, #tpu.memory_space<vmem>>, %arg3: memref<1x8x32xf32, #tpu.memory_space<vmem>>, %arg4: memref<1x8x32xf32, #tpu.memory_space<vmem>>, %arg5: memref<1x8x32xf32, #tpu.memory_space<vmem>>, %arg6: memref<1x1x8xf32, #tpu.memory_space<vmem>>, %arg7: memref<1x8x32xf32, #tpu.memory_space<vmem>>, %arg8: memref<1x1x8xf32, #tpu.memory_space<vmem>>, %arg9: memref<1x8x32xf32, #tpu.memory_space<vmem>>, %arg10: memref<1x1x8xf32, #tpu.memory_space<vmem>>, %arg11: memref<1x1x8x8xf32, #tpu.memory_space<vmem>>, %arg12: memref<1x1x8x8xf32, #tpu.memory_space<vmem>>, %arg13: memref<1x1x8x8xf32, #tpu.memory_space<vmem>>) attributes {dimension_semantics = [#tpu.dimension_semantics<parallel>, #tpu.dimension_semantics<parallel>], iteration_bounds = array<i64: 2, 4>, scalar_prefetch = 0 : i64, scratch_operands = 0 : i64, tpu.core_type = #tpu.core_type<tc>, window_params = [{transform_indices = @transform_0, window_bounds = array<i64: 1, 8, 32>}, {transform_indices = @transform_1, window_bounds = array<i64: 1, 8, 32>}, {transform_indices = @transform_2, window_bounds = array<i64: 1, 8, 32>}, {transform_indices = @transform_3, window_bounds = array<i64: 1, 8, 32>}, {transform_indices = @transform_4, window_bounds = array<i64: 1, 1, 8>}, {transform_indices = @transform_5, window_bounds = array<i64: 1, 8, 32>}, {transform_indices = @transform_6, window_bounds = array<i64: 1, 1, 8>}, {transform_indices = @transform_7, window_bounds = array<i64: 1, 8, 32>}, {transform_indices = @transform_8, window_bounds = array<i64: 1, 1, 8>}, {transform_indices = @transform_9, window_bounds = array<i64: 1, 1, 8, 8>}, {transform_indices = @transform_10, window_bounds = array<i64: 1, 1, 8, 8>}, {transform_indices = @transform_11, window_bounds = array<i64: 1, 1, 8, 8>}]} {
    %c0 = arith.constant 0 : index
    %c0_0 = arith.constant 0 : index
    %c0_1 = arith.constant 0 : index
    %0 = vector.load %arg2[%c0, %c0_0, %c0_1] : memref<1x8x32xf32, #tpu.memory_space<vmem>>, vector<1x8x32xf32>
    %1 = vector.shape_cast %0 : vector<1x8x32xf32> to vector<8x32xf32>
    %c0_2 = arith.constant 0 : index
    %c0_3 = arith.constant 0 : index
    %c0_4 = arith.constant 0 : index
    %2 = vector.load %arg5[%c0_2, %c0_3, %c0_4] : memref<1x8x32xf32, #tpu.memory_space<vmem>>, vector<1x8x32xf32>
    %3 = vector.shape_cast %2 : vector<1x8x32xf32> to vector<8x32xf32>
    %cst = arith.constant dense<0.000000e+00> : vector<8x8xf32>
    %4 = tpu.matmul %1, %3, %cst {dimension_numbers = #tpu.dot_dimension_numbers<[1], [1], [0], [0], [0, 0, 1, 0], [], []>} : vector<8x32xf32>, vector<8x32xf32>, vector<8x8xf32> -> vector<8x8xf32>
    %c0_5 = arith.constant 0 : index
    %c0_6 = arith.constant 0 : index
    %c0_7 = arith.constant 0 : index
    %5 = vector.load %arg6[%c0_5, %c0_6, %c0_7] : memref<1x1x8xf32, #tpu.memory_space<vmem>>, vector<1x1x8xf32>
    %6 = vector.shape_cast %5 : vector<1x1x8xf32> to vector<1x8xf32>
    %7 = vector.broadcast %6 : vector<1x8xf32> to vector<8x8xf32>
    %8 = arith.addf %4, %7 : vector<8x8xf32>
    %c0_8 = arith.constant 0 : index
    %c0_9 = arith.constant 0 : index
    %c0_10 = arith.constant 0 : index
    %c0_11 = arith.constant 0 : index
    %9 = vector.load %arg11[%c0_8, %c0_9, %c0_10, %c0_11] : memref<1x1x8x8xf32, #tpu.memory_space<vmem>>, vector<1x1x8x8xf32>
    %10 = vector.shape_cast %9 : vector<1x1x8x8xf32> to vector<8x8xf32>
    %11 = vector.shape_cast %8 : vector<8x8xf32> to vector<1x1x8x8xf32>
    tpu.vector_store %arg11[%c0_8, %c0_9, %c0_10, %c0_11], %11 {strides = array<i32>} : memref<1x1x8x8xf32, #tpu.memory_space<vmem>>, vector<1x1x8x8xf32>,
    %c0_12 = arith.constant 0 : index
    %c0_13 = arith.constant 0 : index
    %c0_14 = arith.constant 0 : index
    %12 = vector.load %arg3[%c0_12, %c0_13, %c0_14] : memref<1x8x32xf32, #tpu.memory_space<vmem>>, vector<1x8x32xf32>
    %13 = vector.shape_cast %12 : vector<1x8x32xf32> to vector<8x32xf32>
    %c0_15 = arith.constant 0 : index
    %c0_16 = arith.constant 0 : index
    %c0_17 = arith.constant 0 : index
    %14 = vector.load %arg7[%c0_15, %c0_16, %c0_17] : memref<1x8x32xf32, #tpu.memory_space<vmem>>, vector<1x8x32xf32>
    %15 = vector.shape_cast %14 : vector<1x8x32xf32> to vector<8x32xf32>
    %cst_18 = arith.constant dense<0.000000e+00> : vector<8x8xf32>
    %16 = tpu.matmul %13, %15, %cst_18 {dimension_numbers = #tpu.dot_dimension_numbers<[1], [1], [0], [0], [0, 0, 1, 0], [], []>} : vector<8x32xf32>, vector<8x32xf32>, vector<8x8xf32> -> vector<8x8xf32>
    %c0_19 = arith.constant 0 : index
    %c0_20 = arith.constant 0 : index
    %c0_21 = arith.constant 0 : index
    %17 = vector.load %arg8[%c0_19, %c0_20, %c0_21] : memref<1x1x8xf32, #tpu.memory_space<vmem>>, vector<1x1x8xf32>
    %18 = vector.shape_cast %17 : vector<1x1x8xf32> to vector<1x8xf32>
    %19 = vector.broadcast %18 : vector<1x8xf32> to vector<8x8xf32>
    %20 = arith.addf %16, %19 : vector<8x8xf32>
    %c0_22 = arith.constant 0 : index
    %c0_23 = arith.constant 0 : index
    %c0_24 = arith.constant 0 : index
    %c0_25 = arith.constant 0 : index
    %21 = vector.load %arg12[%c0_22, %c0_23, %c0_24, %c0_25] : memref<1x1x8x8xf32, #tpu.memory_space<vmem>>, vector<1x1x8x8xf32>
    %22 = vector.shape_cast %21 : vector<1x1x8x8xf32> to vector<8x8xf32>
    %23 = vector.shape_cast %20 : vector<8x8xf32> to vector<1x1x8x8xf32>
    tpu.vector_store %arg12[%c0_22, %c0_23, %c0_24, %c0_25], %23 {strides = array<i32>} : memref<1x1x8x8xf32, #tpu.memory_space<vmem>>, vector<1x1x8x8xf32>,
    %c0_26 = arith.constant 0 : index
    %c0_27 = arith.constant 0 : index
    %c0_28 = arith.constant 0 : index
    %24 = vector.load %arg4[%c0_26, %c0_27, %c0_28] : memref<1x8x32xf32, #tpu.memory_space<vmem>>, vector<1x8x32xf32>
    %25 = vector.shape_cast %24 : vector<1x8x32xf32> to vector<8x32xf32>
    %c0_29 = arith.constant 0 : index
    %c0_30 = arith.constant 0 : index
    %c0_31 = arith.constant 0 : index
    %26 = vector.load %arg9[%c0_29, %c0_30, %c0_31] : memref<1x8x32xf32, #tpu.memory_space<vmem>>, vector<1x8x32xf32>
    %27 = vector.shape_cast %26 : vector<1x8x32xf32> to vector<8x32xf32>
    %cst_32 = arith.constant dense<0.000000e+00> : vector<8x8xf32>
    %28 = tpu.matmul %25, %27, %cst_32 {dimension_numbers = #tpu.dot_dimension_numbers<[1], [1], [0], [0], [0, 0, 1, 0], [], []>} : vector<8x32xf32>, vector<8x32xf32>, vector<8x8xf32> -> vector<8x8xf32>
    %c0_33 = arith.constant 0 : index
    %c0_34 = arith.constant 0 : index
    %c0_35 = arith.constant 0 : index
    %29 = vector.load %arg10[%c0_33, %c0_34, %c0_35] : memref<1x1x8xf32, #tpu.memory_space<vmem>>, vector<1x1x8xf32>
    %30 = vector.shape_cast %29 : vector<1x1x8xf32> to vector<1x8xf32>
    %31 = vector.broadcast %30 : vector<1x8xf32> to vector<8x8xf32>
    %32 = arith.addf %28, %31 : vector<8x8xf32>
    %c0_36 = arith.constant 0 : index
    %c0_37 = arith.constant 0 : index
    %c0_38 = arith.constant 0 : index
    %c0_39 = arith.constant 0 : index
    %33 = vector.load %arg13[%c0_36, %c0_37, %c0_38, %c0_39] : memref<1x1x8x8xf32, #tpu.memory_space<vmem>>, vector<1x1x8x8xf32>
    %34 = vector.shape_cast %33 : vector<1x1x8x8xf32> to vector<8x8xf32>
    %35 = vector.shape_cast %32 : vector<8x8xf32> to vector<1x1x8x8xf32>
    tpu.vector_store %arg13[%c0_36, %c0_37, %c0_38, %c0_39], %35 {strides = array<i32>} : memref<1x1x8x8xf32, #tpu.memory_space<vmem>>, vector<1x1x8x8xf32>,
    return
  }
  func.func @transform_0(%arg0: i32, %arg1: i32) -> (i32, i32, i32) {
    %c0_i32 = arith.constant 0 : i32
    %c0_i32_0 = arith.constant 0 : i32
    %c0_i32_1 = arith.constant 0 : i32
    return %arg0, %c0_i32, %c0_i32_0 : i32, i32, i32
  }
  func.func @transform_1(%arg0: i32, %arg1: i32) -> (i32, i32, i32) {
    %c0_i32 = arith.constant 0 : i32
    %c0_i32_0 = arith.constant 0 : i32
    %c0_i32_1 = arith.constant 0 : i32
    return %arg0, %c0_i32, %c0_i32_0 : i32, i32, i32
  }
  func.func @transform_2(%arg0: i32, %arg1: i32) -> (i32, i32, i32) {
    %c0_i32 = arith.constant 0 : i32
    %c0_i32_0 = arith.constant 0 : i32
    %c0_i32_1 = arith.constant 0 : i32
    return %arg0, %c0_i32, %c0_i32_0 : i32, i32, i32
  }
  func.func @transform_3(%arg0: i32, %arg1: i32) -> (i32, i32, i32) {
    %c0_i32 = arith.constant 0 : i32
    %c0_i32_0 = arith.constant 0 : i32
    %c0_i32_1 = arith.constant 0 : i32
    return %arg1, %c0_i32, %c0_i32_0 : i32, i32, i32
  }
  func.func @transform_4(%arg0: i32, %arg1: i32) -> (i32, i32, i32) {
    %c0_i32 = arith.constant 0 : i32
    %c0_i32_0 = arith.constant 0 : i32
    %c0_i32_1 = arith.constant 0 : i32
    return %arg1, %c0_i32, %c0_i32_0 : i32, i32, i32
  }
  func.func @transform_5(%arg0: i32, %arg1: i32) -> (i32, i32, i32) {
    %c0_i32 = arith.constant 0 : i32
    %c0_i32_0 = arith.constant 0 : i32
    %c0_i32_1 = arith.constant 0 : i32
    return %arg1, %c0_i32, %c0_i32_0 : i32, i32, i32
  }
  func.func @transform_6(%arg0: i32, %arg1: i32) -> (i32, i32, i32) {
    %c0_i32 = arith.constant 0 : i32
    %c0_i32_0 = arith.constant 0 : i32
    %c0_i32_1 = arith.constant 0 : i32
    return %arg1, %c0_i32, %c0_i32_0 : i32, i32, i32
  }
  func.func @transform_7(%arg0: i32, %arg1: i32) -> (i32, i32, i32) {
    %c0_i32 = arith.constant 0 : i32
    %c0_i32_0 = arith.constant 0 : i32
    %c0_i32_1 = arith.constant 0 : i32
    return %arg1, %c0_i32, %c0_i32_0 : i32, i32, i32
  }
  func.func @transform_8(%arg0: i32, %arg1: i32) -> (i32, i32, i32) {
    %c0_i32 = arith.constant 0 : i32
    %c0_i32_0 = arith.constant 0 : i32
    %c0_i32_1 = arith.constant 0 : i32
    return %arg1, %c0_i32, %c0_i32_0 : i32, i32, i32
  }
  func.func @transform_9(%arg0: i32, %arg1: i32) -> (i32, i32, i32, i32) {
    %c0_i32 = arith.constant 0 : i32
    %c0_i32_0 = arith.constant 0 : i32
    %c0_i32_1 = arith.constant 0 : i32
    return %arg0, %arg1, %c0_i32, %c0_i32_0 : i32, i32, i32, i32
  }
  func.func @transform_10(%arg0: i32, %arg1: i32) -> (i32, i32, i32, i32) {
    %c0_i32 = arith.constant 0 : i32
    %c0_i32_0 = arith.constant 0 : i32
    %c0_i32_1 = arith.constant 0 : i32
    return %arg0, %arg1, %c0_i32, %c0_i32_0 : i32, i32, i32, i32
  }
  func.func @transform_11(%arg0: i32, %arg1: i32) -> (i32, i32, i32, i32) {
    %c0_i32 = arith.constant 0 : i32
    %c0_i32_0 = arith.constant 0 : i32
    %c0_i32_1 = arith.constant 0 : i32
    return %arg0, %arg1, %c0_i32, %c0_i32_0 : i32, i32, i32, i32
  }
}

</mosaic_0001>

<bundles_post_ra>
// kernel: tpu_custom_call.1
= control target key start
LH: loop header
LB: loop body
LE: loop exit
PB: predicated region body
PF: predicated region fallthrough
CT: control target
= control target key end

     0   :  { %s2541_s0 = inlined_call_operand.hbm [shape: f32[2,8,32], index: 0, kind: input, shape index: {}]   ;;  %s2542_s1 = inlined_call_operand.hbm [shape: f32[2,8,32], index: 1, kind: input, shape index: {}]   ;;  %s2543_s2 = inlined_call_operand.hbm [shape: f32[2,8,32], index: 2, kind: input, shape index: {}]   ;;  %s2544_s3 = inlined_call_operand.hbm [shape: f32[4,8,32], index: 3, kind: input, shape index: {}]   ;;  %s2545_s4 = inlined_call_operand.vmem [shape: f32[4,1,8], index: 4, kind: input, shape index: {}]   ;;  %s2546_s5 = inlined_call_operand.hbm [shape: f32[4,8,32], index: 5, kind: input, shape index: {}]   ;;  %s2547_s6 = inlined_call_operand.vmem [shape: f32[4,1,8], index: 6, kind: input, shape index: {}]   ;;  %s2548_s7 = inlined_call_operand.hbm [shape: f32[4,8,32], index: 7, kind: input, shape index: {}]   ;;  %s2549_s8 = inlined_call_operand.vmem [shape: f32[4,1,8], index: 8, kind: input, shape index: {}]   ;;  %s2550_s9 = inlined_call_operand.hbm [shape: f32[2,4,8,8], index: 9, kind: output, shape index: {0}]   ;;  %s2551_s10 = inlined_call_operand.hbm [shape: f32[2,4,8,8], index: 10, kind: output, shape index: {1}]   ;;  %s2552_s11 = inlined_call_operand.hbm [shape: f32[2,4,8,8], index: 11, kind: output, shape index: {2}]  }
   0x1   :  { %2592 = sst [smem:[#allocation42_spill]] %s2541_s0 }
   0x2   :  { %2593 = sst [smem:[#allocation43_spill]] %s2542_s1 }
   0x3   :  { %2594 = sst [smem:[#allocation44_spill]] %s2544_s3 }
   0x4   :  { %2595 = sst [smem:[#allocation45_spill]] %s2545_s4 }
   0x5   :  { %2596 = sst [smem:[#allocation46_spill]] %s2547_s6 }
   0x6   :  { %2597 = sst [smem:[#allocation47_spill]] %s2549_s8 }
   0x7   :  { %2598 = sst [smem:[#allocation48_spill]] %s2550_s9 }
   0x8   :  { %2599 = sst [smem:[#allocation49_spill]] %s2551_s10 }
   0x9   :  { %2600 = sst [smem:[#allocation50_spill]] %s2552_s11 }
   0xa   :  { %17 = vsyncpa [#allocation3], 0 }
   0xb   :  { %19 = vsyncpa [#allocation3 + $0x1], 0 }
   0xc   :  { %20 = vsyncpa [#allocation6], 0 }
   0xd   :  { %22 = vsyncpa [#allocation6 + $0x1], 0 }
   0xe   :  { %23 = vsyncpa [#allocation9], 0 }
   0xf   :  { %25 = vsyncpa [#allocation9 + $0x1], 0 }
  0x10   :  { %26 = vsyncpa [#allocation12], 0 }
  0x11   :  { %28 = vsyncpa [#allocation12 + $0x1], 0 }
  0x12   :  { %29 = vsyncpa [#allocation4], 0 }
  0x13   :  { %31 = vsyncpa [#allocation4 + $0x1], 0 }
  0x14   :  { %32 = vsyncpa [#allocation15], 0 }
  0x15   :  { %34 = vsyncpa [#allocation15 + $0x1], 0  ;;  %s1960_s17 = smov 0   ;;  %s1962_s18 = smov 0  }
  0x16   :  { %s1964_s19 = smov 0   ;;  %s1966_s20 = smov 0  }
  0x17   :  { %s1968_s21 = smov 0   ;;  %s1970_s22 = smov 0  }
  0x18   :  { %s1972_s23 = smov 0   ;;  %s1974_s24 = smov 0  }
  0x19   :  { %s1976_s25 = smov 0   ;;  %s1978_s26 = smov 0  }
  0x1a   :  { %s1980_s27 = smov 0   ;;  %s1982_s28 = smov 0  }
  0x1b   :  { %s1984_s29 = smov 0   ;;  %s1986_s30 = smov 0  }
  0x1c LB: > { %2601 = sst [smem:[#allocation23_spill]] %s1835_s17  ;;  %s2029_s12 = sadd.s32 4294967295, %s1887_s30   ;;  %s1887_s30 = sphi %s1986_s30, %s40_s30   ;;  %s1883_s29 = sphi %s1984_s29, %s2685_s29   ;;  %s1879_s28 = sphi %s1982_s28, %s2684_s28   ;;  %s1875_s27 = sphi %s1980_s27, %s2683_s27   ;;  %s1871_s26 = sphi %s1978_s26, %s2682_s26   ;;  %s1867_s25 = sphi %s1976_s25, %s2691_s25   ;;  %s1863_s24 = sphi %s1974_s24, %s2690_s24   ;;  %s1859_s23 = sphi %s1972_s23, %s2680_s23   ;;  %s1855_s22 = sphi %s1970_s22, %s2689_s22   ;;  %s1851_s21 = sphi %s1968_s21, %s2688_s21   ;;  %s1847_s20 = sphi %s1966_s20, %s2678_s20   ;;  %s1843_s19 = sphi %s1964_s19, %s2677_s19   ;;  %s1839_s18 = sphi %s1962_s18, %s2687_s18   ;;  %s1835_s17 = sphi %s1960_s17, %s2686_s17  }
  0x1d   : > { %2602 = sst [smem:[#allocation24_spill]] %s1843_s19  ;;  %p66_p0 = scmp.ne.s32.totalorder %s1867_s25, %s1863_s24 }
  0x1e   : > { %2603 = sst [smem:[#allocation25_spill]] %s1851_s21  ;;  %p2564_p1 = scmp.eq.s32.totalorder %s1887_s30, 0 }
  0x1f   : > { %2604 = sst [smem:[#allocation26_spill]] %s1863_s24  ;;  %p72_p2 = scmp.ne.s32.totalorder %s1863_s24, %s1859_s23 }
  0x20   : > { %2605 = sst [smem:[#allocation27_spill]] %s1871_s26  ;;  %p2562_p3 = scmp.eq.s32.totalorder %s2029_s12, 0 }
  0x21   : > { %2606 = sst [smem:[#allocation28_spill]] %s1875_s27  ;;  %p68_p5 = por %p2564_p1, %p66_p0 }
  0x22   : > { %2607 = sst [smem:[#allocation29_spill]] %s1879_s28  ;;  %p2043_p6 = por %p2562_p3, %p72_p2 }
  0x23   : > { %2608 = sst [smem:[#allocation30_spill]] %s1883_s29  ;;  %p2561_p7 = scmp.lt.s32.totalorder %s1887_s30, 8 }
  0x24   : > { %2609 = sst [smem:[#allocation31_spill]] %s1887_s30  ;;  %s2556_s16 = sand.u32 1, %s1867_s25  }
  0x25   : > { %s2610_s15 = scalar_select %p2043_p6, 1, 0 }
  0x26   : > { %s2050_s11 = sshll.u32 %s1883_s29, 7  ;;  %s2054_s14 = sshll.u32 %s2556_s16, 3 }
  0x27   : > { %2611 = sst [smem:[#allocation32_spill]] %s2610_s15  ;;  %p2058_p8 = pnand %p2561_p7, %p68_p5 }
  0x28   : > { %s2563_s13 = sand.u32 1, %s1887_s30   ;;  %s2613_s1 = sld [smem:[#allocation43_spill]] }
  0x29   : > { %s2612_s23 = scalar_select %p2058_p8, 1, 0 }
  0x2a   : > { %s410_s6 = scalar_lea.vmem [#allocation5], %s2054_s14  ;;  %s2075_s4 = scalar_lea.sflag [#allocation6], %s2563_s13 }
  0x2b   : > { %s417_s16 = sshll.u32 %s410_s6, 4  ;;  %p2081_p11 = pneg %p2058_p8  ;;  %s2070_s16 = int_to_ptr.vmem [resolvable:$true] %s417_s16 }
  0x2d   : > { %s2614_s26 = scalar_select %p2081_p11, 1, 0 }
  0x2e   : > { %s2067_s8 = scalar_lea.hbm %s2613_s1, %s2050_s11  ;;  %s1494_s6 = scalar_lea.hbm %s2613_s1, 256 }
  0x2f   : > { %s1489_s27 = scalar_lea.hbm %s2067_s8, 128  ;;  %p1495_p0 = scmp.lt.u32.totalorder %s2067_s8, %s2613_s1 }
  0x30   : > { %p1490_p10 = scmp.ne.s32.totalorder %s2067_s8, %s1489_s27  ;;  %p1496_p2 = scmp.lt.u32.totalorder %s1494_s6, %s1489_s27 }
  0x31   : > { %p1498_p7 = scmp.lt.u32.totalorder %s1489_s27, %s2067_s8 }
  0x32   : > { %p1492_p12 = pnand %p2081_p11, %p1490_p10  ;;  %p1497_p5 = por %p1496_p2, %p1495_p0 }
  0x34   : > { %p1493_p13 = pneg %p1492_p12  ;;  %p1499_p4 = por %p1498_p7, %p1497_p5 }
  0x36   : > { %p1500_p3 = pnand %p1499_p4, %p1493_p13 }
  0x38   : > { %1503 = shalt.err (!%p1500_p3)
}
  0x39   : > { %s1504_s13 = scalar_lea.vmem %s2070_s16, 128  ;;  %s1889_s9 = smov [#allocation5]  }
  0x3a   : > { %p1505_p10 = scmp.ne.s32.totalorder %s2070_s16, %s1504_s13  ;;  %s1509_s10 = sshll.u32 %s1889_s9, 4  ;;  %s1510_s10 = int_to_ptr.vmem [resolvable:$false] %s1509_s10 }
  0x3b   : > { %s1511_s24 = scalar_lea.vmem %s1510_s10, 256  ;;  %p1512_p9 = scmp.lt.s32.totalorder %s2070_s16, %s1510_s10 }
  0x3c   : > { %p1507_p12 = pnand %p1505_p10, %p2081_p11  ;;  %p1513_p6 = scmp.lt.s32.totalorder %s1511_s24, %s1504_s13 }
  0x3e   : > { %p1508_p1 = pneg %p1507_p12  ;;  %p1514_p0 = por %p1513_p6, %p1512_p9 }
  0x40   : > { %p1515_p2 = pnand %p1514_p0, %p1508_p1 }
  0x42   : > { %1518 = shalt.err (!%p1515_p2)
}
  0x43   : > { %1350 = dma.hbm_to_vmem [thread:$0]  (!%p2058_p8), %s2067_s8, 128, %s2070_s16, %s2075_s4  }
  0x44   : > { %p512_p1 = scmp.lt.s32.totalorder %s1887_s30, 9  ;;  %p2615_p3 = scmp.ge.s32.totalorder %s1887_s30, 1 }
  0x45   : > { %s49_s15 = sadd.s32 1, %s1879_s28  ;;  %s137_s6 = sadd.s32 1, %s1855_s22 }
  0x46   : > { %p2108_p4 = pnand %p2615_p3, %p512_p1  ;;  %p50_p6 = scmp.ge.s32.totalorder %s49_s15, 4 }
  0x47   : > { %p144_p7 = scmp.ne.s32.totalorder %s1855_s22, %s1851_s21  ;;  %p150_p9 = scmp.ne.s32.totalorder %s1851_s21, %s1847_s20 }
  0x48   : > { %s2616_s27 = scalar_select %p2108_p4, 1, 0 }
  0x49   : > { %s2693_s15 = smov (%p50_p6, %s49_s15), 0  ;;  %s2619_s8 = sadd.s32 1, %s1883_s29 }
  0x4a   : > { %2617 = sst [smem:[#allocation33_spill]] %s2616_s27  ;;  %s2695_s8 = smov (!%p50_p6, %s2619_s8), %s1883_s29 }
  0x4b   : > { %2618 = sst [smem:[#allocation34_spill]] %s2693_s15  ;;  %s134_s16 = ssub.s32 %s1879_s28, %s2693_s15 }
  0x4c   : > { %p2620_p13 = scmp.eq.s32.totalorder %s1887_s30, 0  ;;  %p54_p10 = scmp.ge.s32.totalorder %s2695_s8, 2 }
  0x4d   : > { %p135_p12 = scmp.eq.s32.totalorder %s134_s16, 0  ;;  %p2622_p0 = scmp.eq.s32.totalorder %s2029_s12, 0 }
  0x4e   : > { %p2128_p5 = por %p144_p7, %p2620_p13  ;;  %s295_s10 = sadd.s32 1, %s1843_s19 }
  0x4f   : > { %p2134_p2 = por %p150_p9, %p2622_p0  ;;  %s2697_s8 = smov (%p54_p10, %s2695_s8), 0 }
  0x50   : > { %2625 = sst [smem:[#allocation36_spill]] %s2697_s8  ;;  %s56_s13 = ssub.s32 %s1883_s29, %s2697_s8 }
  0x51   : > { %s2623_s20 = scalar_select %p2134_p2, 1, 0 }
  0x52   : > { %s2142_s24 = scalar_select %p135_p12, %s1855_s22, %s137_s6  }
  0x53   : > { %2624 = sst [smem:[#allocation35_spill]] %s2623_s20  ;;  %p305_p1 = scmp.ne.s32.totalorder %s1843_s19, %s1839_s18 }
  0x54   : > { %2626 = sst [smem:[#allocation37_spill]] %s2142_s24  ;;  %p57_p3 = scmp.eq.s32.totalorder %s56_s13, 0 }
  0x55   : > { %s292_s1 = sor.u32 %s134_s16, %s56_s13  ;;  %p2627_p7 = scmp.eq.s32.totalorder %s2029_s12, 7 }
  0x56   : > { %p293_p6 = scmp.eq.s32.totalorder %s292_s1, 0  ;;  %s2630_s20 = sadd.s32 1, %s1867_s25 }
  0x57   : > { %p2150_p9 = por %p2627_p7, %p305_p1  ;;  %p311_p13 = scmp.ne.s32.totalorder %s1839_s18, %s1835_s17 }
  0x58   : > { %s2157_s21 = scalar_select %p57_p3, %s1867_s25, %s2630_s20  }
  0x59   : > { %s2628_s15 = scalar_select %p2150_p9, 1, 0 }
  0x5a   : > { %2631 = sst [smem:[#allocation39_spill]] %s2157_s21  ;;  %s2633_s6 = sadd.s32 4294967294, %s1887_s30  }
  0x5b   : > { %2629 = sst [smem:[#allocation38_spill]] %s2628_s15  ;;  %p312_p10 = scmp.eq.s32.totalorder %s2633_s6, 7 }
  0x5c   : > { %s2160_s27 = scalar_select %p293_p6, %s1843_s19, %s295_s10  }
  0x5d   : > { %s2573_s8 = sand.u32 1, %s1855_s22   ;;  %p2167_p12 = por %p312_p10, %p311_p13 }
  0x5e   : > { %2632 = sst [smem:[#allocation40_spill]] %s2160_s27  ;;  %s2173_s1 = sshll.u32 %s2573_s8, 3 }
  0x5f   : > { %s2634_s29 = scalar_select %p2167_p12, 1, 0 }
  0x60   : > { %s2176_s13 = sshll.u32 %s1879_s28, 7  ;;  %s2636_s3 = sld [smem:[#allocation44_spill]] }
  0x61   : > { %2635 = sst [smem:[#allocation41_spill]] %s2634_s29  ;;  %s446_s6 = scalar_lea.vmem [#allocation8], %s2173_s1 }
  0x62   : > { %s453_s21 = sshll.u32 %s446_s6, 4  ;;  %p2637_p0 = scmp.lt.s32.totalorder %s1887_s30, 8  ;;  %s2185_s21 = int_to_ptr.vmem [resolvable:$true] %s453_s21 }
  0x63   : > { %s2639_s28 = sand.u32 1, %s1887_s30  }
  0x64   : > { %p2191_p1 = pnand %p2637_p0, %p2128_p5  ;;  %s2197_s24 = scalar_lea.sflag [#allocation9], %s2639_s28 }
  0x66   : > { %s2182_s10 = scalar_lea.hbm %s2636_s3, %s2176_s13  ;;  %p2203_p6 = pneg %p2191_p1 }
  0x67   : > { %s2638_s8 = scalar_select %p2191_p1, 1, 0 }
  0x68   : > { %s1519_s16 = scalar_lea.hbm %s2182_s10, 128  ;;  %s1524_s27 = scalar_lea.hbm %s2636_s3, 512 }
  0x69   : > { %p1520_p3 = scmp.ne.s32.totalorder %s2182_s10, %s1519_s16  ;;  %p1525_p5 = scmp.lt.u32.totalorder %s2182_s10, %s2636_s3 }
  0x6a   : > { %s2640_s20 = scalar_select %p2203_p6, 1, 0 }
  0x6b   : > { %p1522_p7 = pnand %p2203_p6, %p1520_p3  ;;  %p1526_p10 = scmp.lt.u32.totalorder %s1524_s27, %s1519_s16 }
  0x6c   : > { %p1528_p12 = scmp.lt.u32.totalorder %s1519_s16, %s2182_s10 }
  0x6d   : > { %p1523_p13 = pneg %p1522_p7  ;;  %p1527_p0 = por %p1526_p10, %p1525_p5 }
  0x6f   : > { %p1529_p9 = por %p1528_p12, %p1527_p0 }
  0x71   : > { %p1530_p2 = pnand %p1529_p9, %p1523_p13 }
  0x73   : > { %1533 = shalt.err (!%p1530_p2)
}
  0x74   : > { %s1534_s28 = scalar_lea.vmem %s2185_s21, 128  ;;  %s1890_s9 = smov [#allocation8]  }
  0x75   : > { %p1535_p3 = scmp.ne.s32.totalorder %s2185_s21, %s1534_s28  ;;  %s1539_s6 = sshll.u32 %s1890_s9, 4  ;;  %s1540_s6 = int_to_ptr.vmem [resolvable:$false] %s1539_s6 }
  0x76   : > { %s1541_s19 = scalar_lea.vmem %s1540_s6, 256  ;;  %p1542_p8 = scmp.lt.s32.totalorder %s2185_s21, %s1540_s6 }
  0x77   : > { %p1537_p7 = pnand %p1535_p3, %p2203_p6  ;;  %p1543_p11 = scmp.lt.s32.totalorder %s1541_s19, %s1534_s28 }
  0x79   : > { %p1538_p4 = pneg %p1537_p7  ;;  %p1544_p5 = por %p1543_p11, %p1542_p8 }
  0x7b   : > { %p1545_p10 = pnand %p1544_p5, %p1538_p4 }
  0x7d   : > { %1548 = shalt.err (!%p1545_p10)
}
  0x7e   : > { %1356 = dma.hbm_to_vmem [thread:$0]  (!%p2191_p1), %s2182_s10, 128, %s2185_s21, %s2197_s24  }
  0x7f   : > { %s2641_s0 = sld [smem:[#allocation42_spill]]  ;;  %s392_s28 = scalar_lea.vmem [#allocation2], %s2054_s14 }
  0x80   : > { %s399_s9 = sshll.u32 %s392_s28, 4  ;;  %s2240_s3 = scalar_lea.hbm %s2543_s2, %s2050_s11  ;;  %s2234_s9 = int_to_ptr.vmem [resolvable:$true] %s399_s9 }
  0x81   : > { %s2642_s17 = sand.u32 1, %s1867_s25   ;;  %p2643_p11 = scmp.ne.s32.totalorder %s2614_s26, 0 }
  0x82   : > { %s389_s21 = scalar_lea.sflag [#allocation3], %s2642_s17 }
  0x85   : > { %s2231_s16 = scalar_lea.hbm %s2641_s0, %s2050_s11  ;;  %s1554_s30 = scalar_lea.hbm %s2641_s0, 256 }
  0x86   : > { %s1549_s10 = scalar_lea.hbm %s2231_s16, 128  ;;  %p1555_p9 = scmp.lt.u32.totalorder %s2231_s16, %s2641_s0 }
  0x87   : > { %p1550_p8 = scmp.ne.s32.totalorder %s2231_s16, %s1549_s10  ;;  %p1556_p12 = scmp.lt.u32.totalorder %s1554_s30, %s1549_s10 }
  0x88   : > { %p1558_p0 = scmp.lt.u32.totalorder %s1549_s10, %s2231_s16 }
  0x89   : > { %p1552_p4 = pnand %p1550_p8, %p2643_p11  ;;  %p1557_p13 = por %p1556_p12, %p1555_p9 }
  0x8b   : > { %p1553_p2 = pneg %p1552_p4  ;;  %p1559_p3 = por %p1558_p0, %p1557_p13 }
  0x8d   : > { %p1560_p7 = pnand %p1559_p3, %p1553_p2 }
  0x8f   : > { %1563 = shalt.err (!%p1560_p7)
}
  0x90   : > { %s1564_s11 = scalar_lea.vmem %s2234_s9, 128  ;;  %s1891_s17 = smov [#allocation2]  }
  0x91   : > { %p1565_p5 = scmp.ne.s32.totalorder %s2234_s9, %s1564_s11  ;;  %s1569_s6 = sshll.u32 %s1891_s17, 4  ;;  %s1570_s6 = int_to_ptr.vmem [resolvable:$false] %s1569_s6 }
  0x92   : > { %s1571_s15 = scalar_lea.vmem %s1570_s6, 256  ;;  %p1572_p4 = scmp.lt.s32.totalorder %s2234_s9, %s1570_s6 }
  0x93   : > { %p1567_p10 = pnand %p1565_p5, %p2643_p11  ;;  %p1573_p1 = scmp.lt.s32.totalorder %s1571_s15, %s1564_s11 }
  0x95   : > { %p1568_p8 = pneg %p1567_p10  ;;  %p1574_p9 = por %p1573_p1, %p1572_p4 }
  0x97   : > { %p1575_p12 = pnand %p1574_p9, %p1568_p8 }
  0x99   : > { %1578 = shalt.err (!%p1575_p12)
}
  0x9a   : > { %p2644_p2 = scmp.ne.s32.totalorder %s2612_s23, 0  ;;  %s428_s30 = scalar_lea.vmem [#allocation7], %s2054_s14 }
  0x9b   : > { %s435_s19 = sshll.u32 %s428_s30, 4  ;;  %s2270_s27 = scalar_lea.hbm %s2546_s5, %s2176_s13  ;;  %s436_s19 = int_to_ptr.vmem [resolvable:$true] %s435_s19 }
  0x9c   : > { %1347 = dma.hbm_to_vmem [thread:$0]  (!%p2644_p2), %s2231_s16, 128, %s2234_s9, %s389_s21  }
  0x9d   : > { %s1579_s28 = scalar_lea.hbm %s2240_s3, 128  ;;  %s1584_s6 = scalar_lea.hbm %s2543_s2, 256 }
  0x9e   : > { %p1580_p1 = scmp.ne.s32.totalorder %s2240_s3, %s1579_s28  ;;  %p1585_p3 = scmp.lt.u32.totalorder %s2240_s3, %s2543_s2 }
  0x9f   : > { %p1586_p7 = scmp.lt.u32.totalorder %s1584_s6, %s1579_s28  ;;  %p1588_p10 = scmp.lt.u32.totalorder %s1579_s28, %s2240_s3 }
  0xa0   : > { %p1582_p13 = pnand %p1580_p1, %p2643_p11 }
  0xa1   : > { %p1587_p5 = por %p1586_p7, %p1585_p3 }
  0xa2   : > { %p1583_p0 = pneg %p1582_p13 }
  0xa3   : > { %p1589_p8 = por %p1588_p10, %p1587_p5 }
  0xa5   : > { %p1590_p4 = pnand %p1589_p8, %p1583_p0 }
  0xa7   : > { %1593 = shalt.err (!%p1590_p4)
}
  0xa8   : > { %s1594_s14 = scalar_lea.vmem %s436_s19, 128  ;;  %s1892_s16 = smov [#allocation7]  }
  0xa9   : > { %p1595_p9 = scmp.ne.s32.totalorder %s436_s19, %s1594_s14  ;;  %s1599_s9 = sshll.u32 %s1892_s16, 4  ;;  %s1600_s9 = int_to_ptr.vmem [resolvable:$false] %s1599_s9 }
  0xaa   : > { %s1601_s21 = scalar_lea.vmem %s1600_s9, 256  ;;  %p1602_p13 = scmp.lt.s32.totalorder %s436_s19, %s1600_s9 }
  0xab   : > { %p1597_p12 = pnand %p1595_p9, %p2643_p11  ;;  %p1603_p6 = scmp.lt.s32.totalorder %s1601_s21, %s1594_s14 }
  0xad   : > { %p1598_p1 = pneg %p1597_p12  ;;  %p1604_p2 = por %p1603_p6, %p1602_p13 }
  0xaf   : > { %p1605_p3 = pnand %p1604_p2, %p1598_p1 }
  0xb1   : > { %1608 = shalt.err (!%p1605_p3)
}
  0xb2   : > { %p2645_p7 = scmp.ne.s32.totalorder %s2612_s23, 0  ;;  %s470_s0 = scalar_lea.vmem [#allocation10], %s2173_s1 }
  0xb3   : > { %s477_s26 = sshll.u32 %s470_s0, 4  ;;  %s1609_s30 = scalar_lea.hbm %s2270_s27, 128  ;;  %s478_s26 = int_to_ptr.vmem [resolvable:$true] %s477_s26 }
  0xb4   : > { %1353 = dma.hbm_to_vmem [thread:$0]  (!%p2645_p7), %s2240_s3, 128, %s436_s19, %s2075_s4  }
  0xb5   : > { %p1610_p11 = scmp.ne.s32.totalorder %s2270_s27, %s1609_s30  ;;  %p2646_p0 = scmp.ne.s32.totalorder %s2640_s20, 0 }
  0xb6   : > { %s1614_s23 = scalar_lea.hbm %s2546_s5, 512  ;;  %p1615_p5 = scmp.lt.u32.totalorder %s2270_s27, %s2546_s5 }
  0xb7   : > { %p1612_p6 = pnand %p1610_p11, %p2646_p0  ;;  %p1616_p10 = scmp.lt.u32.totalorder %s1614_s23, %s1609_s30 }
  0xb8   : > { %p1618_p4 = scmp.lt.u32.totalorder %s1609_s30, %s2270_s27 }
  0xb9   : > { %p1613_p2 = pneg %p1612_p6  ;;  %p1617_p8 = por %p1616_p10, %p1615_p5 }
  0xbb   : > { %p1619_p9 = por %p1618_p4, %p1617_p8 }
  0xbd   : > { %p1620_p12 = pnand %p1619_p9, %p1613_p2 }
  0xbf   : > { %1623 = shalt.err (!%p1620_p12)
}
  0xc0   : > { %s1624_s3 = scalar_lea.vmem %s478_s26, 128  ;;  %s1893_s4 = smov [#allocation10]  }
  0xc1   : > { %p1625_p1 = scmp.ne.s32.totalorder %s478_s26, %s1624_s3  ;;  %s1629_s19 = sshll.u32 %s1893_s4, 4  ;;  %s1630_s19 = int_to_ptr.vmem [resolvable:$false] %s1629_s19 }
  0xc2   : > { %s1631_s17 = scalar_lea.vmem %s1630_s19, 256  ;;  %p1632_p7 = scmp.lt.s32.totalorder %s478_s26, %s1630_s19 }
  0xc3   : > { %p1627_p13 = pnand %p1625_p1, %p2646_p0  ;;  %p1633_p11 = scmp.lt.s32.totalorder %s1631_s17, %s1624_s3 }
  0xc5   : > { %p1628_p3 = pneg %p1627_p13  ;;  %p1634_p6 = por %p1633_p11, %p1632_p7 }
  0xc7   : > { %p1635_p5 = pnand %p1634_p6, %p1628_p3 }
  0xc9   : > { %1638 = shalt.err (!%p1635_p5)
}
  0xca   : > { %p2647_p10 = scmp.ne.s32.totalorder %s2638_s8, 0  ;;  %s2313_s14 = scalar_lea.hbm %s2548_s7, %s2176_s13 }
  0xcb   : > { %s494_s16 = scalar_lea.vmem [#allocation11], %s2173_s1  ;;  %s2648_s21 = sand.u32 1, %s1855_s22  }
  0xcc   : > { %1359 = dma.hbm_to_vmem [thread:$0]  (!%p2647_p10), %s2270_s27, 128, %s478_s26, %s2197_s24  }
  0xcd   : > { %s501_s9 = sshll.u32 %s494_s16, 4  ;;  %s491_s0 = scalar_lea.sflag [#allocation12], %s2648_s21  ;;  %s502_s9 = int_to_ptr.vmem [resolvable:$true] %s501_s9 }
  0xce   : > { %s1639_s30 = scalar_lea.hbm %s2313_s14, 128  ;;  %s1644_s26 = scalar_lea.hbm %s2548_s7, 512 }
  0xcf   : > { %p1640_p2 = scmp.ne.s32.totalorder %s2313_s14, %s1639_s30  ;;  %p1645_p9 = scmp.lt.u32.totalorder %s2313_s14, %s2548_s7 }
  0xd0   : > { %p1646_p12 = scmp.lt.u32.totalorder %s1644_s26, %s1639_s30  ;;  %p1648_p13 = scmp.lt.u32.totalorder %s1639_s30, %s2313_s14 }
  0xd1   : > { %p1642_p8 = pnand %p1640_p2, %p2646_p0 }
  0xd2   : > { %p1647_p1 = por %p1646_p12, %p1645_p9 }
  0xd3   : > { %p1643_p4 = pneg %p1642_p8 }
  0xd4   : > { %p1649_p3 = por %p1648_p13, %p1647_p1 }
  0xd6   : > { %p1650_p7 = pnand %p1649_p3, %p1643_p4 }
  0xd8   : > { %1653 = shalt.err (!%p1650_p7)
}
  0xd9   : > { %s1654_s1 = scalar_lea.vmem %s502_s9, 128  ;;  %s1894_s29 = smov [#allocation11]  }
  0xda   : > { %p1655_p11 = scmp.ne.s32.totalorder %s502_s9, %s1654_s1  ;;  %s1659_s23 = sshll.u32 %s1894_s29, 4  ;;  %s1660_s23 = int_to_ptr.vmem [resolvable:$false] %s1659_s23 }
  0xdb   : > { %s1661_s28 = scalar_lea.vmem %s1660_s23, 256  ;;  %p1662_p2 = scmp.lt.s32.totalorder %s502_s9, %s1660_s23 }
  0xdc   : > { %p1657_p6 = pnand %p1655_p11, %p2646_p0  ;;  %p1663_p8 = scmp.lt.s32.totalorder %s1661_s28, %s1654_s1 }
  0xde   : > { %p1658_p5 = pneg %p1657_p6  ;;  %p1664_p10 = por %p1663_p8, %p1662_p2 }
  0xe0   : > { %p1665_p9 = pnand %p1664_p10, %p1658_p5 }
  0xe2   : > { %1668 = shalt.err (!%p1665_p9)
}
  0xe3   : > { %p2649_p12 = scmp.ne.s32.totalorder %s2638_s8, 0  ;;  %s2650_s11 = sld [smem:[#allocation33_spill]] }
  0xe5   : > { %1362 = dma.hbm_to_vmem [thread:$0]  (!%p2649_p12), %s2313_s14, 128, %s502_s9, %s491_s0  }
  0xe9   : > { %p2651_p4 = scmp.ne.s32.totalorder %s2650_s11, 0 }
  0xea   : > { %s2652_s3 = sld [smem:[#allocation26_spill]] (!%p2651_p4)  ;;  %s2653_s20 = sld [smem:[#allocation32_spill]] (!%p2651_p4) }
  0xeb   : > { %516 = sbr.rel (%p2651_p4) target bundleno = 545 (0x221), region = 56 }
  0xf0   : > { %s518_s4 = sand.u32 (!%p2651_p4), 1, %s2652_s3   ;;  %p2654_p0 = scmp.ne.s32.totalorder (!%p2651_p4), %s2653_s20, 0 }
  0xf1   : > { %s2338_s19 = sshll.u32 (!%p2651_p4), %s518_s4, 3  ;;  %s519_s17 = scalar_lea.sflag (!%p2651_p4), [#allocation3], %s518_s4 }
  0xf2   : > { %s522_s6 = scalar_lea.vmem [#allocation2], %s2338_s19 }
  0xf3   : > { %1810 = dma.done.wait (%p2654_p0), %s519_s17, 128  }
  0xf4   : > { %1812 = vsyncadd (%p2654_p0), %s519_s17, 4294967168  ;;  %s2346_s8 = sand.u32 1, %s2029_s12   ;;  %s531_s14 = scalar_lea.vmem [#allocation5], %s2338_s19 }
  0xf5   : > { %s528_s15 = scalar_lea.sflag [#allocation6], %s2346_s8 }
  0xf6   : > { %1814 = dma.done.wait (%p2654_p0), %s528_s15, 256  }
  0xf7   : > { %1816 = vsyncadd (%p2654_p0), %s528_s15, 4294967040  ;;  %s2655_s16 = sld [smem:[#allocation25_spill]]  ;;  %s2656_s9 = sld [smem:[#allocation35_spill]] }
  0xf8   : > { %s540_s30 = scalar_lea.vmem [#allocation7], %s2338_s19  ;;  %s546_s24 = scalar_lea.sflag [#allocation9], %s2346_s8 }
  0xfd   : > { %s547_s21 = sand.u32 1, %s2655_s16   ;;  %p2657_p10 = scmp.ne.s32.totalorder %s2656_s9, 0 }
  0xfe   : > { %s1279_s0 = sshll.u32 %s547_s21, 3 }
  0xff   : > { %s549_s27 = scalar_lea.vmem [#allocation8], %s1279_s0 }
 0x100   : > { %1818 = dma.done.wait (%p2657_p10), %s546_s24, 256  }
 0x101   : > { %1820 = vsyncadd (%p2657_p10), %s546_s24, 4294967040  ;;  %s558_s12 = scalar_lea.vmem [#allocation10], %s1279_s0  ;;  %s564_s26 = scalar_lea.sflag [#allocation12], %s547_s21 }
 0x102   : > { %s567_s13 = scalar_lea.vmem [#allocation11], %s1279_s0 }
 0x103   : > { %1822 = dma.done.wait (%p2657_p10), %s564_s26, 128  }
 0x104   : > { %1824 = vsyncadd (%p2657_p10), %s564_s26, 4294967168  ;;  %v1895_v0 = vmov 0.0   ;;  %vm1896_vm0 = vmmov 0   ;;  %s2658_s10 = sld [smem:[#allocation27_spill]]  ;;  %vm668_vm1 = vcmask 261120   ;;  %v660_v1 = vld [vmem:[%s549_s27] sm:$0xff] }
 0x105   : > { %1311 = vmatprep.subr.mxu0 %v1895_v0  ;;  %1313 = vmatprep.mubr.msk.f32.mxu0 %vm1896_vm0, %v1895_v0  ;;  %v748_v2 = vld [vmem:[%s558_s12] sm:$0xff]  ;;  %s2659_s1 = sld [smem:[#allocation28_spill]]  ;;  %v747_v4 = vld [vmem:[%s531_s14] sm:$0xff]  ;;  %s633_s23 = sand.u32 1, %s1839_s18   ;;  %vm745_vm2 = vcmask 64512  }
 0x106   : > { %1316 = vmatprep.subr.mxu1 %v1895_v0  ;;  %1318 = vmatprep.mubr.msk.f32.mxu1 %vm1896_vm0, %v1895_v0  ;;  %v659_v3 = vld [vmem:[%s522_s6] sm:$0xff]  ;;  %v834_v5 = vld [vmem:[%s567_s13] sm:$0xff]  ;;  %s2660_s20 = sld [smem:[#allocation45_spill]]  ;;  %s2377_s19 = sshll.u32 %s633_s23, 3 }
 0x107   : > { %1312 = vmatpush3.xpose.msk.msra.mxu0 %vm668_vm1, %v660_v1  ;;  %1317 = vmatpush3.xpose.msk.msra.mxu1 %vm668_vm1, %v748_v2  ;;  %v833_v6 = vld [vmem:[%s540_s30] sm:$0xff]  ;;  %s2661_s14 = sld [smem:[#allocation46_spill]]  ;;  %s2662_s0 = sld [smem:[#allocation47_spill]] }
 0x108   : > { %1321 = vmatprep.subr.mxu0 %v1895_v0  ;;  %s642_s27 = scalar_lea.vmem [#allocation14], %s2377_s19  ;;  %s635_s26 = scalar_lea.vmem [#allocation13], %s2377_s19 }
 0x109   : > { %s960_s12 = sshll.u32 %s642_s27, 4  ;;  %s945_s13 = sshll.u32 %s635_s26, 4  ;;  %s2396_s12 = int_to_ptr.vmem [resolvable:$true] %s960_s12  ;;  %s2403_s13 = int_to_ptr.vmem [resolvable:$true] %s945_s13 }
 0x10a   : > { %1314 = vmatmul.mubr.msk.f32.vlgmr.msra.gmra.mrb[0].mxu0 %vm668_vm1, %v659_v3  ;;  %1319 = vmatmul.mubr.msk.f32.vlgmr.msra.gmra.mrb[0].mxu1 %vm668_vm1, %v747_v4  ;;  %p650_p1 = scmp.lt.s32.totalorder %s2658_s10, 3  ;;  %s2666_s15 = sld [smem:[#allocation48_spill]] }
 0x10b   : > { %1322 = vmatpush3.xpose.msk.msra.mxu0 %vm668_vm1, %v834_v5  ;;  %1323 = vmatprep.mubr.msk.f32.mxu0 %vm1896_vm0, %v1895_v0  ;;  %s1297_s28 = sshll.u32 %s2659_s1, 2  ;;  %s2667_s21 = sld [smem:[#allocation50_spill]] }
 0x10c   : > { %s651_s29 = scalar_select %p650_p1, %s2658_s10, 3 }
 0x10d   : > { %s941_s17 = sadd.s32 %s2658_s10, %s1297_s28  ;;  %s2663_s28 = sld [smem:[#allocation49_spill]] }
 0x10e   : > { %1324 = vmatmul.mubr.msk.f32.vlgmr.msra.gmra.mrb[2].mxu0 %vm668_vm1, %v833_v6  ;;  %s652_s4 = scalar_lea.vmem %s2660_s20, %s651_s29  ;;  %s655_s16 = scalar_lea.vmem %s2661_s14, %s651_s29 }
 0x10f   : > { %s658_s30 = scalar_lea.vmem %s2662_s0, %s651_s29  ;;  %s1298_s24 = sshll.u32 %s941_s17, 7  ;;  %v1285_v7 = vld [vmem:[%s652_s4] ss:$0 sm:$0xff] }
 0x110   : > { %v1288_v8 = vld [vmem:[%s655_s16] ss:$0 sm:$0xff]  ;;  %s649_s20 = scalar_lea.vmem [#allocation16], %s2377_s19  ;;  %s2665_s29 = sld [smem:[#allocation38_spill]] }
 0x111   : > { %s975_s6 = sshll.u32 %s649_s20, 4  ;;  %v1291_v15 = vld [vmem:[%s658_s30] ss:$0 sm:$0xff]  ;;  %s2401_s14 = scalar_lea.hbm %s2666_s15, %s1298_s24  ;;  %s2412_s6 = int_to_ptr.vmem [resolvable:$true] %s975_s6 }
 0x112   : > { %s2668_s0 = smov %s2667_s21  ;;  %s2410_s1 = scalar_lea.hbm %s2667_s21, %s1298_s24 }
 0x113   : > { %s2664_s11 = smov %s2663_s28  ;;  %s2391_s3 = scalar_lea.hbm %s2663_s28, %s1298_s24 }
 0x114   : > { %s925_s30 = scalar_lea.sflag [#allocation15], %s2346_s8  ;;  %s1669_s10 = scalar_lea.vmem %s2396_s12, 128 }
 0x115   : > { %p1670_p13 = scmp.ne.s32.totalorder %s2396_s12, %s1669_s10  ;;  %s1897_s28 = smov [#allocation14]  }
 0x116   : > { %p2669_p3 = scmp.ne.s32.totalorder %s2665_s29, 0  ;;  %s1673_s4 = sshll.u32 %s1897_s28, 4  ;;  %s1674_s4 = int_to_ptr.vmem [resolvable:$false] %s1673_s4 }
 0x117   : > { %p1676_p6 = scmp.lt.s32.totalorder %s2396_s12, %s1674_s4 }
 0x118   : > { %p1671_p7 = pnand %p1670_p13, %p2669_p3 }
 0x11a   : > { %p1672_p11 = pneg %p1671_p7 }
 0x1dd   : > { %v741_v9 = vpop.f32.mrb[0].mxu0  ;;  %v828_v10 = vpop.f32.mrb[0].mxu1 }
 0x1de   : > { %v742_v11 = vadd.f32 %v1285_v7, %v741_v9  ;;  %v1315_v12 = vpop.f32.mrb[1].mxu0  ;;  %v829_v13 = vadd.f32 %v1288_v8, %v828_v10  ;;  %v1320_v14 = vpop.f32.mrb[1].mxu1 }
 0x1e0   : > { %832 = vst.msk [vmem:[%s642_s27] sm:$0xff] %vm745_vm2, %v829_v13  ;;  %746 = vst.msk [vmem:[%s635_s26] sm:$0xff] %vm745_vm2, %v742_v11  ;;  %s1675_s27 = scalar_lea.vmem %s1674_s4, 256 }
 0x1e1   : > { %v914_v16 = vpop.f32.mrb[2].mxu0  ;;  %p1677_p5 = scmp.lt.s32.totalorder %s1675_s27, %s1669_s10 }
 0x1e3   : > { %p1678_p2 = por %p1677_p5, %p1676_p6 }
 0x1e5   : > { %p1679_p8 = pnand %p1678_p2, %p1672_p11 }
 0x1e7   : > { %1682 = shalt.err (!%p1679_p8)
}
 0x1e8   : > { %s1683_s24 = scalar_lea.hbm %s2391_s3, 128  ;;  %s1687_s16 = scalar_lea.hbm %s2664_s11, 1024 }
 0x1e9   : > { %p1684_p9 = scmp.ne.s32.totalorder %s2391_s3, %s1683_s24  ;;  %p1688_p0 = scmp.lt.u32.totalorder %s2391_s3, %s2664_s11 }
 0x1ea   : > { %p1689_p10 = scmp.lt.u32.totalorder %s1687_s16, %s1683_s24  ;;  %p1691_p13 = scmp.lt.u32.totalorder %s1683_s24, %s2391_s3 }
 0x1eb   : > { %p1685_p12 = pnand %p1684_p9, %p2669_p3 }
 0x1ec   : > { %p1690_p1 = por %p1689_p10, %p1688_p0 }
 0x1ed   : > { %p1686_p4 = pneg %p1685_p12 }
 0x1ee   : > { %p1692_p7 = por %p1691_p13, %p1690_p1 }
 0x1f0   : > { %p1693_p11 = pnand %p1692_p7, %p1686_p4 }
 0x1f2   : > { %1696 = shalt.err (!%p1693_p11)
}
 0x1f3   : > { %1339 = dma.vmem_to_hbm [thread:$0]  (%p2669_p3), %s2396_s12, 128, %s2391_s3, %s925_s30   ;;  %v915_v17 = vadd.f32 %v1291_v15, %v914_v16  ;;  %v1325_v18 = vpop.f32.mrb[3].mxu0 }
 0x1f4   : > { %s920_s10 = scalar_lea.sflag [#allocation4], %s633_s23  ;;  %s1697_s28 = scalar_lea.vmem %s2403_s13, 128 }
 0x1f5   : > { %p1698_p6 = scmp.ne.s32.totalorder %s2403_s13, %s1697_s28  ;;  %s1898_s4 = smov [#allocation13]  }
 0x1f6   : > { %s1701_s27 = sshll.u32 %s1898_s4, 4  ;;  %s1702_s27 = int_to_ptr.vmem [resolvable:$false] %s1701_s27 }
 0x1f7   : > { %p1699_p5 = pnand %p1698_p6, %p2669_p3  ;;  %s1703_s24 = scalar_lea.vmem %s1702_s27, 256 }
 0x1f8   : > { %p1704_p8 = scmp.lt.s32.totalorder %s2403_s13, %s1702_s27  ;;  %p1705_p9 = scmp.lt.s32.totalorder %s1703_s24, %s1697_s28 }
 0x1f9   : > { %p1700_p2 = pneg %p1699_p5 }
 0x1fa   : > { %p1706_p12 = por %p1705_p9, %p1704_p8 }
 0x1fc   : > { %p1707_p4 = pnand %p1706_p12, %p1700_p2 }
 0x1fe   : > { %1710 = shalt.err (!%p1707_p4)
}
 0x1ff   : > { %s1711_s23 = scalar_lea.hbm %s2401_s14, 128  ;;  %s1715_s26 = scalar_lea.hbm %s2666_s15, 1024 }
 0x200   : > { %p1712_p0 = scmp.ne.s32.totalorder %s2401_s14, %s1711_s23  ;;  %p1716_p13 = scmp.lt.u32.totalorder %s2401_s14, %s2666_s15 }
 0x201   : > { %p1717_p7 = scmp.lt.u32.totalorder %s1715_s26, %s1711_s23  ;;  %p1719_p6 = scmp.lt.u32.totalorder %s1711_s23, %s2401_s14 }
 0x202   : > { %p1713_p10 = pnand %p1712_p0, %p2669_p3 }
 0x203   : > { %p1718_p11 = por %p1717_p7, %p1716_p13 }
 0x204   : > { %p1714_p1 = pneg %p1713_p10 }
 0x205   : > { %p1720_p5 = por %p1719_p6, %p1718_p11 }
 0x207   : > { %p1721_p2 = pnand %p1720_p5, %p1714_p1 }
 0x209   : > { %1724 = shalt.err (!%p1721_p2)
}
 0x20a   : > { %1338 = dma.vmem_to_hbm [thread:$0]  (%p2669_p3), %s2403_s13, 128, %s2401_s14, %s920_s10   ;;  %918 = vst.msk [vmem:[%s649_s20] sm:$0xff] %vm745_vm2, %v915_v17 }
 0x20b   : > { %s1725_s9 = scalar_lea.vmem %s2412_s6, 128  ;;  %s1899_s21 = smov [#allocation16]  }
 0x20c   : > { %p1726_p8 = scmp.ne.s32.totalorder %s2412_s6, %s1725_s9  ;;  %s1729_s28 = sshll.u32 %s1899_s21, 4  ;;  %s1730_s28 = int_to_ptr.vmem [resolvable:$false] %s1729_s28 }
 0x20d   : > { %s1731_s4 = scalar_lea.vmem %s1730_s28, 256  ;;  %p1732_p4 = scmp.lt.s32.totalorder %s2412_s6, %s1730_s28 }
 0x20e   : > { %p1727_p9 = pnand %p1726_p8, %p2669_p3  ;;  %p1733_p0 = scmp.lt.s32.totalorder %s1731_s4, %s1725_s9 }
 0x210   : > { %p1728_p12 = pneg %p1727_p9  ;;  %p1734_p10 = por %p1733_p0, %p1732_p4 }
 0x212   : > { %p1735_p1 = pnand %p1734_p10, %p1728_p12 }
 0x214   : > { %1738 = shalt.err (!%p1735_p1)
}
 0x215   : > { %s1739_s19 = scalar_lea.hbm %s2410_s1, 128  ;;  %s1743_s14 = scalar_lea.hbm %s2668_s0, 1024 }
 0x216   : > { %p1740_p13 = scmp.ne.s32.totalorder %s2410_s1, %s1739_s19  ;;  %p1744_p6 = scmp.lt.u32.totalorder %s2410_s1, %s2668_s0 }
 0x217   : > { %p1745_p5 = scmp.lt.u32.totalorder %s1743_s14, %s1739_s19  ;;  %p1747_p8 = scmp.lt.u32.totalorder %s1739_s19, %s2410_s1 }
 0x218   : > { %p1741_p7 = pnand %p1740_p13, %p2669_p3 }
 0x219   : > { %p1746_p2 = por %p1745_p5, %p1744_p6 }
 0x21a   : > { %p1742_p11 = pneg %p1741_p7 }
 0x21b   : > { %p1748_p9 = por %p1747_p8, %p1746_p2 }
 0x21d   : > { %p1749_p12 = pnand %p1748_p9, %p1742_p11 }
 0x21f   : > { %1752 = shalt.err (!%p1749_p12)
}
 0x220   : > { %1340 = dma.vmem_to_hbm [thread:$0]  (%p2669_p3), %s2412_s6, 128, %s2410_s1, %s925_s30  }
 0x221 PF: > { %s2670_s24 = sld [smem:[#allocation31_spill]]  ;;  %s2671_s23 = sld [smem:[#allocation23_spill]] }
 0x222   : > { %s2672_s12 = sld [smem:[#allocation41_spill]] }
 0x227   : > { %p1374_p4 = scmp.ge.s32.totalorder %s2670_s24, 2  ;;  %s987_s3 = sand.u32 1, %s2671_s23  }
 0x228   : > { %p2673_p0 = scmp.ne.s32.totalorder %s2672_s12, 0  ;;  %s988_s26 = scalar_lea.sflag [#allocation4], %s987_s3 }
 0x22a   : > { %p1364_p10 = pnand %p1374_p4, %p2673_p0 }
 0x22c   : > { %1826 = dma.done.wait (!%p1364_p10), %s988_s26, 128  }
 0x22d   : > { %1828 = vsyncadd (!%p1364_p10), %s988_s26, 4294967168  ;;  %s2674_s17 = sadd.s32 4294967294, %s2670_s24  }
 0x22e   : > { %s996_s16 = sand.u32 1, %s2674_s17  }
 0x22f   : > { %s997_s29 = scalar_lea.sflag [#allocation15], %s996_s16 }
 0x230   : > { %1830 = dma.done.wait (!%p1364_p10), %s997_s29, 256  }
 0x231   : > { %1832 = vsyncadd (!%p1364_p10), %s997_s29, 4294967040  ;;  %s40_s30 = sadd.s32 1, %s2670_s24   ;;  %s2676_s6 = sld [smem:[#allocation24_spill]] }
 0x232   : > { %p2494_p3 = scmp.ge.s32.totalorder %s40_s30, 10   ;;  %s2677_s19 = sld [smem:[#allocation40_spill]] }
 0x233   : > { %s2678_s20 = sld [smem:[#allocation25_spill]]  ;;  %s2679_s1 = sld [smem:[#allocation37_spill]] }
 0x234   : > { %s2680_s23 = sld [smem:[#allocation26_spill]]  ;;  %s2681_s9 = sld [smem:[#allocation39_spill]] }
 0x235   : > { %s2682_s26 = sld [smem:[#allocation29_spill]]  ;;  %s2683_s27 = sld [smem:[#allocation30_spill]] }
 0x236   : > { %s2684_s28 = sld [smem:[#allocation34_spill]]  ;;  %s2685_s29 = sld [smem:[#allocation36_spill]] }
 0x237   : > { %s2686_s17 = smov %s1839_s18  ;;  %s2687_s18 = smov %s2676_s6 }
 0x238   : > { %s2688_s21 = smov %s1855_s22  ;;  %s2690_s24 = smov %s1867_s25 }
 0x239   : > { %s2689_s22 = smov %s2679_s1  ;;  %39 = sbr.rel (!%p2494_p3) target bundleno = 28 (0x1c), region = 203 }
 0x23a   : > { %s2691_s25 = smov %s2681_s9 }
 0x240   :  { %1011 = vsyncpa [#allocation3], 1 }
 0x241   :  { %1013 = vsyncpa [#allocation3 + $0x1], 1 }
 0x242   :  { %1014 = vsyncpa [#allocation6], 1 }
 0x243   :  { %1016 = vsyncpa [#allocation6 + $0x1], 1 }
 0x244   :  { %1017 = vsyncpa [#allocation9], 1 }
 0x245   :  { %1019 = vsyncpa [#allocation9 + $0x1], 1 }
 0x246   :  { %1020 = vsyncpa [#allocation12], 1 }
 0x247   :  { %1022 = vsyncpa [#allocation12 + $0x1], 1 }
 0x248   :  { %1023 = vsyncpa [#allocation4], 1 }
 0x249   :  { %1025 = vsyncpa [#allocation4 + $0x1], 1 }
 0x24a   :  { %1026 = vsyncpa [#allocation15], 1 }
 0x24b   :  { %1028 = vsyncpa [#allocation15 + $0x1], 1 }

</bundles_post_ra>
